<compile_context>
chip_gen: v6e
topology: v6e:2x2x1
jax: 0.10.0
libtpu: 0.0.40
codegen_flags: <defaults>
</compile_context>

<pallas_src>
import functools

import jax
import jax.numpy as jnp
from jax.experimental import pallas as pl
from jax.experimental.pallas import tpu as pltpu

LANE = 128
_VMEM_BUDGET = 24 * 1024 * 1024       # per-kernel working-set target (fits v7x)
_VMEM_LIMIT = 32 * 1024 * 1024        # scoped VMEM limit (<= physical on all gens)


def _round_up(x, m):
    return (x + m - 1) // m * m


def _pick_row_tile(n, row_bytes, resident_bytes,
                   budget_bytes=_VMEM_BUDGET, cap=256):
    """Largest multiple-of-8 row tile whose double-buffered working set fits."""
    avail = max(budget_bytes - resident_bytes, 8 * row_bytes)
    tm = max(8, (int(avail // row_bytes) // 8) * 8)
    return min(tm, cap, _round_up(n, 8))


# --------------------------------------------------------------------------- #
# Kernel A: shared feature transform  fts = x @ W                              #
# --------------------------------------------------------------------------- #
def _fts_kernel(x_ref, w_ref, fts_ref):
    fts_ref[...] = jnp.dot(x_ref[...], w_ref[...],
                           preferred_element_type=jnp.float32)


def fts_pallas(x_pad, w_pad, *, tm):
    n, fp = x_pad.shape
    hp = w_pad.shape[1]
    return pl.pallas_call(
        _fts_kernel,
        out_shape=jax.ShapeDtypeStruct((n, hp), jnp.float32),
        grid=(pl.cdiv(n, tm),),
        in_specs=[
            pl.BlockSpec((tm, fp), lambda i: (i, 0)),     # x row tile (bf16)
            pl.BlockSpec((fp, hp), lambda i: (0, 0)),     # W resident (bf16)
        ],
        out_specs=pl.BlockSpec((tm, hp), lambda i: (i, 0)),
        cost_estimate=pl.CostEstimate(
            flops=2 * n * fp * hp, transcendentals=0,
            bytes_accessed=n * fp * 2 + fp * hp * 2 + n * hp * 4),
        compiler_params=pltpu.CompilerParams(
            dimension_semantics=("parallel",),
            vmem_limit_bytes=_VMEM_LIMIT),
    )(x_pad, w_pad)


# --------------------------------------------------------------------------- #
# Kernel B: fused GCN aggregation for both branches                            #
#   h_cat = PReLU( d_row * (A_raw @ g) + bias ),   g = d ⊙ [fts | fts_perm]    #
# --------------------------------------------------------------------------- #
def _gcn_agg_kernel(a_ref, adj_ref, d_ref, g_ref, b_ref, h_ref):
    # adj_ref : (TM, N)  raw (un-normalized) adjacency rows, f32 straight from HBM
    # d_ref   : (TM, 1)  D^{-1/2} for these rows
    # g_ref   : (N, 2Hp) D^{-1/2}-scaled [fts | fts_perm], bf16, VMEM resident
    # b_ref   : (1, 2Hp) GCN bias duplicated for both branches
    # a_ref   : (1, 1)   PReLU slope (SMEM scalar)
    adj = adj_ref[...].astype(jnp.bfloat16)   # cast in VMEM: bf16 MXU path,
                                              # zero extra HBM traffic
    acc = jnp.dot(adj, g_ref[...], preferred_element_type=jnp.float32)  # (TM, 2Hp)
    out = acc * d_ref[...] + b_ref[...]       # fold row-side D^{-1/2}, then bias
    a = a_ref[0, 0]
    h_ref[...] = jnp.maximum(out, 0.0) + a * jnp.minimum(out, 0.0)      # PReLU


def gcn_agg_pallas(adj, d_col, g_cat, bias_cat, a_pr, *, tm):
    n = adj.shape[0]
    two_hp = g_cat.shape[1]
    return pl.pallas_call(
        _gcn_agg_kernel,
        out_shape=jax.ShapeDtypeStruct((n, two_hp), jnp.float32),
        grid=(pl.cdiv(n, tm),),
        in_specs=[
            pl.BlockSpec(memory_space=pltpu.MemorySpace.SMEM),  # a_pr (1,1)
            pl.BlockSpec((tm, n), lambda i: (i, 0)),            # adj row tile
            pl.BlockSpec((tm, 1), lambda i: (i, 0)),            # d rows
            pl.BlockSpec((n, two_hp), lambda i: (0, 0)),        # g (resident)
            pl.BlockSpec((1, two_hp), lambda i: (0, 0)),        # bias (resident)
        ],
        out_specs=pl.BlockSpec((tm, two_hp), lambda i: (i, 0)),
        cost_estimate=pl.CostEstimate(
            flops=2 * n * n * two_hp, transcendentals=0,
            bytes_accessed=n * n * 4 + n * two_hp * 2 + n * two_hp * 4 + n * 4),
        compiler_params=pltpu.CompilerParams(
            dimension_semantics=("parallel",),
            vmem_limit_bytes=_VMEM_LIMIT),
    )(a_pr, adj, d_col, g_cat, bias_cat)


# --------------------------------------------------------------------------- #
# Kernel C: AvgReadout + sigmoid + bilinear discriminator + BCE-with-logits    #
# --------------------------------------------------------------------------- #
def _disc_loss_kernel(bb_ref, h_ref, wbt_ref, loss_ref, c_ref, *, hp, n_nodes):
    h = h_ref[...]                                        # (N, 2Hp) f32
    h1 = h[:, :hp]
    h2 = h[:, hp:]
    # AvgReadout (msk=None) followed by sigmoid
    c = jax.nn.sigmoid(jnp.mean(h1, axis=0, keepdims=True))          # (1, Hp)
    # Bilinear discriminator with out_features=1:
    #   sc[n] = sum_{i,j} h[n,i] * W_bil[i,j] * c[j] + bias
    #         = sum_i h[n,i] * (c @ W_bil^T)[i] + bias
    t = jnp.dot(c, wbt_ref[...], preferred_element_type=jnp.float32)  # (1, Hp)
    bb = bb_ref[0, 0]
    sc1 = jnp.sum(h1 * t, axis=1, keepdims=True) + bb     # (N,1) VPU mul + XLU reduce
    sc2 = jnp.sum(h2 * t, axis=1, keepdims=True) + bb
    # BCEWithLogitsLoss, labels = [ones(N), zeros(N)]:
    #   elem = max(x,0) - x*y + log1p(exp(-|x|))
    pos = jnp.maximum(sc1, 0.0) - sc1 + jnp.log1p(jnp.exp(-jnp.abs(sc1)))
    neg = jnp.maximum(sc2, 0.0) + jnp.log1p(jnp.exp(-jnp.abs(sc2)))
    loss_ref[0, 0] = (jnp.sum(pos) + jnp.sum(neg)) / jnp.float32(2 * n_nodes)
    c_ref[...] = c


def disc_loss_pallas(h_cat, w_bil_t, b_bil, *, hp, n_nodes):
    kern = functools.partial(_disc_loss_kernel, hp=hp, n_nodes=n_nodes)
    vmem = pl.BlockSpec(memory_space=pltpu.MemorySpace.VMEM)
    smem = pl.BlockSpec(memory_space=pltpu.MemorySpace.SMEM)
    return pl.pallas_call(
        kern,
        out_shape=(jax.ShapeDtypeStruct((1, 1), jnp.float32),   # loss
                   jax.ShapeDtypeStruct((1, hp), jnp.float32)), # c (padded)
        in_specs=[smem, vmem, vmem],
        out_specs=(vmem, vmem),
        compiler_params=pltpu.CompilerParams(vmem_limit_bytes=_VMEM_LIMIT),
    )(b_bil, h_cat, w_bil_t)


# --------------------------------------------------------------------------- #
# Plain-JAX glue mirroring the host-side numpy preprocessing of CL.forward     #
# --------------------------------------------------------------------------- #
def preprocess_features(x):
    # row-normalize: diag(1/rowsum) @ x, inf -> 0
    rowsum = jnp.sum(x, axis=1, keepdims=True)
    r_inv = jnp.where(rowsum == 0.0, 0.0, 1.0 / rowsum)
    return x * r_inv


def cl_forward(point_nodes, point_similarities, params, perm_key):
    """Mirrors CL.forward. point_nodes/point_similarities: lists of (1,N,F)/(1,N,N)."""
    x = point_nodes[0][0].astype(jnp.float32)               # (N, F)
    adj = point_similarities[0][0].astype(jnp.float32)      # (N, N)
    n, f = x.shape
    fp, hp = params["f_pad"], params["h_pad"]
    h_units = params["hid_units"]

    feats = preprocess_features(x)

    # process.normalize_adj is folded into kernel B: only the degree vector is
    # computed here; the raw adjacency is streamed exactly once by the kernel.
    # (The module consumes symmetric similarity matrices, for which
    #  D^-1/2 A^T D^-1/2 == D^-1/2 A D^-1/2; pass adj.T for a non-symmetric adj.
    #  As in the original CL.forward, no self-loops are added.)
    rowsum = jnp.sum(adj, axis=1)
    d = jnp.power(rowsum, -0.5)
    d = jnp.where(jnp.isinf(d), 0.0, d)                      # (N,)

    # node shuffle (np.random.permutation in the original; different RNG stream)
    perm = jax.random.permutation(perm_key, n)

    # ---- kernel A: shared feature transform --------------------------------
    x_pad = jnp.pad(feats, ((0, 0), (0, fp - f))).astype(jnp.bfloat16)
    w_pad = params["w_gcn"].astype(jnp.bfloat16)             # (Fp, Hp)
    tma = _pick_row_tile(n, row_bytes=2 * fp * 2 + 2 * hp * 4,
                         resident_bytes=2 * fp * hp * 2)
    fts = fts_pallas(x_pad, w_pad, tm=tma)                   # (N, Hp) f32

    # shuffled branch reuses fts:  x[perm] @ W == (x @ W)[perm]
    g_cat = jnp.concatenate([fts, fts[perm, :]], axis=1) * d[:, None]
    g_cat = g_cat.astype(jnp.bfloat16)                       # (N, 2Hp)
    bias_cat = jnp.concatenate([params["b_gcn"], params["b_gcn"]], axis=1)

    # ---- kernel B: fused adjacency aggregation for both branches -----------
    two_hp = 2 * hp
    tm = _pick_row_tile(n, row_bytes=2 * n * 4 + 2 * two_hp * 4 + 8,
                        resident_bytes=2 * n * two_hp * 2 + two_hp * 4)
    h_cat = gcn_agg_pallas(adj, d.reshape(n, 1), g_cat, bias_cat,
                           params["a_pr"], tm=tm)            # (N, 2Hp) f32

    # ---- kernel C: readout + discriminator + loss --------------------------
    loss, c_pad = disc_loss_pallas(h_cat, params["w_bil_t"], params["b_bil"],
                                   hp=hp, n_nodes=n)

    h1 = h_cat[:, :h_units]
    h2 = h_cat[:, hp:hp + h_units]
    c = c_pad[:, :h_units]
    # restore the batch=1 dim / list packaging of the torch module
    return loss[0, 0], [h1[None]], [h2[None]], [c]


def init_params(key, emb_size, hid_units):
    kw, kb = jax.random.split(key, 2)
    f, h = emb_size, hid_units
    fp, hp = _round_up(f, LANE), _round_up(h, LANE)
    # GCN linear: torch weight (H, F) xavier_uniform -> bound sqrt(6/(F+H));
    # stored transposed and zero-padded to (Fp, Hp).
    bnd = (6.0 / (f + h)) ** 0.5
    w = jax.random.uniform(kw, (f, h), jnp.float32, minval=-bnd, maxval=bnd)
    w_gcn = jnp.zeros((fp, hp), jnp.float32).at[:f, :h].set(w)
    # Bilinear weight (1, H, H) xavier_uniform: fan_in = H*H, fan_out = H;
    # stored transposed and zero-padded to (Hp, Hp).
    bnd_b = (6.0 / (h * h + h)) ** 0.5
    wb = jax.random.uniform(kb, (h, h), jnp.float32, minval=-bnd_b, maxval=bnd_b)
    w_bil_t = jnp.zeros((hp, hp), jnp.float32).at[:h, :h].set(wb.T)
    return {
        "w_gcn": w_gcn,                                # (Fp, Hp)
        "b_gcn": jnp.zeros((1, hp), jnp.float32),      # (1, Hp)
        "a_pr": jnp.full((1, 1), 0.25, jnp.float32),   # PReLU default slope
        "w_bil_t": w_bil_t,                            # (Hp, Hp) = W_bil^T padded
        "b_bil": jnp.zeros((1, 1), jnp.float32),
        "hid_units": h, "emb_size": f, "f_pad": fp, "h_pad": hp,
    }


if __name__ == "__main__":
    N, EMB, HID = 512, 32, 32       # nb_nodes, emb_size, hid_units
    BATCH = 1                       # batch dim of point_nodes is 1 in CL.forward

    key = jax.random.PRNGKey(0)
    kx, ka, kperm, kparam = jax.random.split(key, 4)

    point_nodes = [jax.random.uniform(kx, (BATCH, N, EMB), jnp.float32)]
    sim = jax.random.uniform(ka, (BATCH, N, N), jnp.float32)
    point_similarities = [(sim + jnp.swapaxes(sim, 1, 2)) * 0.5]   # symmetric similarity

    params = init_params(kparam, EMB, HID)

    # TODO(synk): np.random.permutation in the torch module is a host-side RNG;
    # reproduced here with jax.random.permutation (different stream, same dist).
    loss, list1, list2, clist = cl_forward(point_nodes, point_similarities,
                                           params, kperm)
    jax.block_until_ready((loss, list1[0], list2[0], clist[0]))

    assert list1[0].shape == (1, N, HID)
    assert list2[0].shape == (1, N, HID)
    assert clist[0].shape == (1, HID)
    assert bool(jnp.isfinite(loss))
    print("KERNEL_OK")
</pallas_src>

<mosaic_0001>
module attributes {stable_mosaic.version = 11 : i64} {
  func.func @_fts_kernel(%arg0: i32, %arg1: memref<256x128xbf16, #tpu.memory_space<vmem>>, %arg2: memref<128x128xbf16, #tpu.memory_space<vmem>>, %arg3: memref<256x128xf32, #tpu.memory_space<vmem>>) attributes {dimension_semantics = [#tpu.dimension_semantics<parallel>], iteration_bounds = array<i64: 2>, scalar_prefetch = 0 : i64, scratch_operands = 0 : i64, tpu.core_type = #tpu.core_type<tc>, window_params = [{transform_indices = @transform_0, window_bounds = array<i64: 256, 128>}, {pipeline_mode = #tpu.pipeline_mode<synchronous>, transform_indices = @transform_1, window_bounds = array<i64: 128, 128>}, {transform_indices = @transform_2, window_bounds = array<i64: 256, 128>}]} {
    %c0 = arith.constant 0 : index
    %c0_0 = arith.constant 0 : index
    %0 = vector.load %arg1[%c0, %c0_0] : memref<256x128xbf16, #tpu.memory_space<vmem>>, vector<256x128xbf16>
    %c0_1 = arith.constant 0 : index
    %c0_2 = arith.constant 0 : index
    %1 = vector.load %arg2[%c0_1, %c0_2] : memref<128x128xbf16, #tpu.memory_space<vmem>>, vector<128x128xbf16>
    %cst = arith.constant dense<0.000000e+00> : vector<256x128xf32>
    %2 = tpu.matmul %0, %1, %cst {dimension_numbers = #tpu.dot_dimension_numbers<[1], [0], [0], [1], [0, 0, 1, 1], [], []>} : vector<256x128xbf16>, vector<128x128xbf16>, vector<256x128xf32> -> vector<256x128xf32>
    %c0_3 = arith.constant 0 : index
    %c0_4 = arith.constant 0 : index
    %3 = vector.load %arg3[%c0_3, %c0_4] : memref<256x128xf32, #tpu.memory_space<vmem>>, vector<256x128xf32>
    tpu.vector_store %arg3[%c0_3, %c0_4], %2 {strides = array<i32>} : memref<256x128xf32, #tpu.memory_space<vmem>>, vector<256x128xf32>,
    return
  }
  func.func @transform_0(%arg0: i32) -> (i32, i32) {
    %c0_i32 = arith.constant 0 : i32
    %c0_i32_0 = arith.constant 0 : i32
    return %arg0, %c0_i32 : i32, i32
  }
  func.func @transform_1(%arg0: i32) -> (i32, i32) {
    %c0_i32 = arith.constant 0 : i32
    %c0_i32_0 = arith.constant 0 : i32
    %c0_i32_1 = arith.constant 0 : i32
    return %c0_i32, %c0_i32_0 : i32, i32
  }
  func.func @transform_2(%arg0: i32) -> (i32, i32) {
    %c0_i32 = arith.constant 0 : i32
    %c0_i32_0 = arith.constant 0 : i32
    return %arg0, %c0_i32 : i32, i32
  }
}

</mosaic_0001>

<bundles_post_ra>
// kernel: tpu_custom_call.1
= control target key start
LH: loop header
LB: loop body
LE: loop exit
PB: predicated region body
PF: predicated region fallthrough
CT: control target
= control target key end

     0   :  { %7 = vsyncpa [#allocation3], 0  ;;  %s1260_s0 = inlined_call_operand.hbm [shape: bf16[512,128], index: 0, kind: input, shape index: {}]   ;;  %s1261_s1 = inlined_call_operand.hbm [shape: bf16[128,128], index: 1, kind: input, shape index: {}]   ;;  %s1262_s2 = inlined_call_operand.hbm [shape: f32[512,128], index: 2, kind: output, shape index: {}]  }
   0x1   :  { %9 = vsyncpa [#allocation3 + $0x1], 0 }
   0x2   :  { %10 = vsyncpa [#allocation6], 0 }
   0x3   :  { %11 = vsyncpa [#allocation4], 0 }
   0x4   :  { %13 = vsyncpa [#allocation4 + $0x1], 0  ;;  %s1023_s9 = smov 0   ;;  %s1025_s10 = smov 0  }
   0x5   :  { %s1027_s11 = smov 0   ;;  %s1029_s12 = smov 0  }
   0x6 LB: > { %s1044_s13 = sadd.s32 4294967295, %s999_s12   ;;  %s662_s14 = sadd.s32 4294967294, %s999_s12   ;;  %s999_s12 = sphi %s1029_s12, %s1284_s12   ;;  %s995_s11 = sphi %s1027_s11, %s1283_s11   ;;  %s991_s10 = sphi %s1025_s10, %s1282_s10   ;;  %s987_s9 = sphi %s1023_s9, %s1281_s9  }
   0x7   : > { %p39_p0 = scmp.ne.s32.totalorder %s991_s10, %s987_s9  ;;  %p1263_p1 = scmp.eq.s32.totalorder %s1044_s13, 0 }
   0x8   : > { %p90_p3 = scmp.eq.s32.totalorder %s662_s14, 1  ;;  %p663_p5 = scmp.ge.s32.totalorder %s999_s12, 1 }
   0x9   : > { %p1053_p4 = por %p1263_p1, %p39_p0  ;;  %p97_p7 = scmp.lt.s32.totalorder %s999_s12, 3 }
   0xa   : > { %p1058_p6 = por %p90_p3, %p39_p0  ;;  %s1001_s18 = smov [#allocation5]  }
   0xb   : > { %s1267_s15 = scalar_select %p1053_p4, 1, 0 }
   0xc   : > { %s1268_s16 = scalar_select %p1058_p6, 1, 0 }
   0xd   : > { %p1063_p8 = pnand %p663_p5, %p97_p7  ;;  %s109_s19 = sshll.u32 %s1001_s18, 4  ;;  %s110_s19 = int_to_ptr.vmem [resolvable:$true] %s109_s19 }
   0xe   : > { %s1077_s21 = sadd.s32 1, %s999_s12   ;;  %s26_s22 = sadd.s32 1, %s995_s11 }
   0xf   : > { %s1269_s17 = scalar_select %p1063_p8, 1, 0 }
  0x10   : > { %p800_p9 = pneg %p1063_p8  ;;  %s23_s23 = ssub.s32 %s999_s12, %s1077_s21 }
  0x11   : > { %s888_s24 = scalar_lea.vmem %s110_s19, 1024  ;;  %p896_p5 = scmp.lt.s32.totalorder %s110_s19, %s110_s19 }
  0x12   : > { %p1072_p11 = pnand %p800_p9, %p1263_p1  ;;  %p889_p13 = scmp.ne.s32.totalorder %s110_s19, %s888_s24 }
  0x13   : > { %p897_p7 = scmp.lt.s32.totalorder %s888_s24, %s888_s24 }
  0x14   : > { %p879_p12 = pneg %p1072_p11 }
  0x15   : > { %p898_p10 = por %p897_p7, %p896_p5 }
  0x16   : > { %p891_p0 = pnand %p889_p13, %p879_p12 }
  0x18   : > { %p892_p3 = pneg %p891_p0 }
  0x1a   : > { %p899_p2 = pnand %p898_p10, %p892_p3 }
  0x1c   : > { %902 = shalt.err (!%p899_p2)
}
  0x1d   : > { %s1002_s25 = smov 64   ;;  %s1003_s26 = smov 4  }
  0x1e   : > { %803 = dma.hbm_to_vmem [thread:$0]  (!%p1072_p11), %s1261_s1, 1024, %s110_s19, [#allocation6], %s1002_s25, %s1002_s25, %s1003_s26  }
  0x1f   : > { %p24_p2 = scmp.eq.s32.totalorder %s23_s23, 0  ;;  %p33_p9 = scmp.ne.s32.totalorder %s995_s11, %s991_s10 }
  0x20   : > { %p34_p10 = scmp.eq.s32.totalorder %s999_s12, 0  ;;  %p813_p12 = scmp.lt.s32.totalorder %s999_s12, 2 }
  0x21   : > { %s1097_s29 = scalar_select %p24_p2, %s995_s11, %s26_s22  }
  0x22   : > { %p35_p13 = por %p34_p10, %p33_p9  ;;  %p1271_p0 = scmp.eq.s32.totalorder %s1044_s13, 1 }
  0x23   : > { %s123_s3 = sand.u32 1, %s995_s11   ;;  %s702_s4 = sshll.u32 %s999_s12, 11 }
  0x24   : > { %p1101_p3 = por %p1271_p0, %p33_p9  ;;  %s666_s5 = sshll.u32 %s123_s3, 7 }
  0x25   : > { %s1110_s8 = scalar_lea.hbm %s1260_s0, %s702_s4  ;;  %s127_s14 = scalar_lea.vmem [#allocation2], %s666_s5 }
  0x26   : > { %s1272_s30 = scalar_select %p1101_p3, 1, 0 }
  0x27   : > { %s134_s18 = sshll.u32 %s127_s14, 4  ;;  %p1112_p11 = pnand %p813_p12, %p35_p13  ;;  %s1116_s18 = int_to_ptr.vmem [resolvable:$true] %s134_s18 }
  0x28   : > { %s1118_s20 = scalar_lea.sflag [#allocation3], %s123_s3  ;;  %s903_s22 = scalar_lea.hbm %s1110_s8, 2048 }
  0x29   : > { %p904_p5 = scmp.ne.s32.totalorder %s1110_s8, %s903_s22  ;;  %p905_p7 = pneg %p1112_p11 }
  0x2a   : > { %s908_s27 = scalar_lea.hbm %s1260_s0, 4096  ;;  %p909_p10 = scmp.lt.s32.totalorder %s1110_s8, %s1260_s0 }
  0x2b   : > { %p906_p2 = pnand %p905_p7, %p904_p5  ;;  %p910_p12 = scmp.lt.s32.totalorder %s908_s27, %s903_s22 }
  0x2d   : > { %p907_p9 = pneg %p906_p2  ;;  %p911_p13 = por %p910_p12, %p909_p10 }
  0x2f   : > { %p912_p0 = pnand %p911_p13, %p907_p9 }
  0x31   : > { %915 = shalt.err (!%p912_p0)
}
  0x32   : > { %s916_s3 = scalar_lea.vmem %s1116_s18, 2048  ;;  %s1004_s5 = smov [#allocation2]  }
  0x33   : > { %p917_p1 = scmp.ne.s32.totalorder %s1116_s18, %s916_s3  ;;  %s921_s6 = sshll.u32 %s1004_s5, 4  ;;  %s922_s6 = int_to_ptr.vmem [resolvable:$false] %s921_s6 }
  0x34   : > { %s923_s7 = scalar_lea.vmem %s922_s6, 4096  ;;  %p924_p2 = scmp.lt.s32.totalorder %s1116_s18, %s922_s6 }
  0x35   : > { %p919_p6 = pnand %p917_p1, %p905_p7  ;;  %p925_p3 = scmp.lt.s32.totalorder %s923_s7, %s916_s3 }
  0x37   : > { %p920_p5 = pneg %p919_p6  ;;  %p926_p4 = por %p925_p3, %p924_p2 }
  0x39   : > { %p927_p8 = pnand %p926_p4, %p920_p5 }
  0x3b   : > { %930 = shalt.err (!%p927_p8)
}
  0x3c   : > { %807 = dma.hbm_to_vmem [thread:$0]  (!%p1112_p11), %s1110_s8, 2048, %s1116_s18, %s1118_s20, %s1002_s25, %s1002_s25, %s1003_s26  }
  0x3d   : > { %p1274_p1 = scmp.ne.s32.totalorder %s1269_s17, 0 }
  0x3e   : > { %s1145_s14 = sand.u32 (!%p1274_p1), 1, %s991_s10   ;;  %p1275_p4 = scmp.ne.s32.totalorder (!%p1274_p1), %s1267_s15, 0 }
  0x3f   : > { %146 = sbr.rel (%p1274_p1) target bundleno = 342 (0x156), region = 28  ;;  %s670_s22 = sshll.u32 (!%p1274_p1), %s1145_s14, 7 }
  0x40   : > { %s149_s23 = scalar_lea.sflag (!%p1274_p1), [#allocation3], %s1145_s14  ;;  %s1149_s24 = scalar_lea.vmem (!%p1274_p1), [#allocation2], %s670_s22 }
  0x44   : > { %974 = dma.done.wait (%p1275_p4), %s149_s23, 2048  }
  0x45   : > { %976 = vsyncadd (%p1275_p4), %s149_s23, 4294965248  ;;  %p1276_p6 = scmp.eq.s32.totalorder %s1044_s13, 0 }
  0x47   : > { %978 = dma.done.wait (%p1276_p6), [#allocation6], 1024   ;;  %p1277_p8 = pmov %p1276_p6 }
  0x48   : > { %v853_v0 = vld [vmem:[#allocation5 + $0x38] sm:$0xff]   ;;  %v854_v1 = vld [vmem:[#allocation5 + $0x30] sm:$0xff]   ;;  %v855_v2 = vld [vmem:[#allocation5 + $0x28] sm:$0xff]   ;;  %s672_s15 = sshll.u32 %s1145_s14, 8  ;;  %s703_s25 = sshll.u32 %s1044_s13, 12 }
  0x49   : > { %980 = vsyncadd (%p1277_p8), [#allocation6], 4294966272  ;;  %728 = vmatprep.subr.bf16.mxu0 %v853_v0  ;;  %776 = vmatprep.subr.bf16.mxu1 %v853_v0  ;;  %v856_v3 = vld [vmem:[#allocation5 + $0x20] sm:$0xff]   ;;  %v857_v6 = vld [vmem:[#allocation5 + $0x18] sm:$0xff]   ;;  %s1176_s17 = scalar_lea.vmem [#allocation7], %s672_s15  ;;  %s1211_s19 = scalar_lea.hbm %s1262_s2, %s703_s25 }
  0x4a   : > { %729 = vmatpush3.bf16.msra.mxu0 %v853_v0  ;;  %784 = vmatpush3.bf16.msra.mxu1 %v853_v0  ;;  %v861_v4 = vld [vmem:[%s1149_s24] sm:$0xff]   ;;  %v858_v7 = vld [vmem:[#allocation5 + $0x10] sm:$0xff]   ;;  %v859_v8 = vld [vmem:[#allocation5 + $0x8] sm:$0xff]   ;;  %s579_s26 = sshll.u32 %s1176_s17, 4  ;;  %s566_s13 = scalar_lea.sflag [#allocation4], %s1145_s14  ;;  %s1213_s26 = int_to_ptr.vmem [resolvable:$true] %s579_s26 }
  0x4b   : > { %730 = vmatprep.subr.bf16.mxu0 %v854_v1  ;;  %777 = vmatprep.subr.bf16.mxu1 %v854_v1  ;;  %v862_v5 = vld [vmem:[%s1149_s24 + $0x40] sm:$0xff]   ;;  %v863_v10 = vld [vmem:[%s1149_s24 + $0x8] sm:$0xff]   ;;  %v865_v12 = vld [vmem:[%s1149_s24 + $0x10] sm:$0xff]   ;;  %s931_s20 = scalar_lea.vmem %s1213_s26, 4096  ;;  %p1278_p11 = scmp.ne.s32.totalorder %s1272_s30, 0 }
  0x4c   : > { %744 = vmatprep.mubr.bf16.mxu0 %v861_v4  ;;  %760 = vmatprep.mubr.bf16.mxu1 %v862_v5  ;;  %v860_v9 = vld [vmem:[#allocation5] sm:$0xff]   ;;  %v864_v11 = vld [vmem:[%s1149_s24 + $0x48] sm:$0xff]   ;;  %v866_v13 = vld [vmem:[%s1149_s24 + $0x50] sm:$0xff]   ;;  %p932_p3 = scmp.ne.s32.totalorder %s1213_s26, %s931_s20  ;;  %s1005_s27 = smov [#allocation7]  }
  0x4d   : > { %v867_v14 = vld [vmem:[%s1149_s24 + $0x18] sm:$0xff]   ;;  %v869_v16 = vld [vmem:[%s1149_s24 + $0x20] sm:$0xff]   ;;  %v871_v18 = vld [vmem:[%s1149_s24 + $0x28] sm:$0xff]   ;;  %s935_s28 = sshll.u32 %s1005_s27, 4  ;;  %s936_s28 = int_to_ptr.vmem [resolvable:$false] %s935_s28 }
  0x4e   : > { %731 = vmatpush3.bf16.msra.mxu0 %v854_v1  ;;  %785 = vmatpush3.bf16.msra.mxu1 %v854_v1  ;;  %v868_v15 = vld [vmem:[%s1149_s24 + $0x58] sm:$0xff]   ;;  %v870_v17 = vld [vmem:[%s1149_s24 + $0x60] sm:$0xff]   ;;  %v872_v19 = vld [vmem:[%s1149_s24 + $0x68] sm:$0xff]   ;;  %p933_p7 = pnand %p932_p3, %p1278_p11  ;;  %s937_s4 = scalar_lea.vmem %s936_s28, 8192 }
  0x4f   : > { %732 = vmatprep.subr.bf16.mxu0 %v855_v2  ;;  %778 = vmatprep.subr.bf16.mxu1 %v855_v2  ;;  %v873_v20 = vld [vmem:[%s1149_s24 + $0x30] sm:$0xff]   ;;  %v875_v22 = vld [vmem:[%s1149_s24 + $0x38] sm:$0xff]   ;;  %p938_p10 = scmp.lt.s32.totalorder %s1213_s26, %s936_s28  ;;  %p939_p12 = scmp.lt.s32.totalorder %s937_s4, %s931_s20 }
  0x50   : > { %v874_v21 = vld [vmem:[%s1149_s24 + $0x70] sm:$0xff]   ;;  %v876_v23 = vld [vmem:[%s1149_s24 + $0x78] sm:$0xff]   ;;  %p934_p9 = pneg %p933_p7 }
  0x51   : > { %p940_p13 = por %p939_p12, %p938_p10 }
  0x52   : > { %733 = vmatpush3.bf16.msra.mxu0 %v855_v2  ;;  %786 = vmatpush3.bf16.msra.mxu1 %v855_v2 }
  0x53   : > { %734 = vmatprep.subr.bf16.mxu0 %v856_v3  ;;  %779 = vmatprep.subr.bf16.mxu1 %v856_v3  ;;  %p941_p0 = pnand %p940_p13, %p934_p9 }
  0x56   : > { %735 = vmatpush3.bf16.msra.mxu0 %v856_v3  ;;  %787 = vmatpush3.bf16.msra.mxu1 %v856_v3 }
  0x57   : > { %736 = vmatprep.subr.bf16.mxu0 %v857_v6  ;;  %780 = vmatprep.subr.bf16.mxu1 %v857_v6 }
  0x5a   : > { %737 = vmatpush3.bf16.msra.mxu0 %v857_v6  ;;  %788 = vmatpush3.bf16.msra.mxu1 %v857_v6 }
  0x5b   : > { %738 = vmatprep.subr.bf16.mxu0 %v858_v7  ;;  %781 = vmatprep.subr.bf16.mxu1 %v858_v7 }
  0x5e   : > { %739 = vmatpush3.bf16.msra.mxu0 %v858_v7  ;;  %789 = vmatpush3.bf16.msra.mxu1 %v858_v7 }
  0x5f   : > { %740 = vmatprep.subr.bf16.mxu0 %v859_v8  ;;  %782 = vmatprep.subr.bf16.mxu1 %v859_v8 }
  0x62   : > { %741 = vmatpush3.bf16.msra.mxu0 %v859_v8  ;;  %790 = vmatpush3.bf16.msra.mxu1 %v859_v8 }
  0x63   : > { %742 = vmatprep.subr.bf16.mxu0 %v860_v9  ;;  %783 = vmatprep.subr.bf16.mxu1 %v860_v9 }
  0x66   : > { %743 = vmatpush3.bf16.msra.mxu0 %v860_v9  ;;  %791 = vmatpush3.bf16.msra.mxu1 %v860_v9 }
  0x69   : > { %745 = vmatmul.mubr.bf16.vlgmr.msra.gmra.mxu0 %v863_v10  ;;  %761 = vmatmul.mubr.bf16.vlgmr.msra.gmra.mxu1 %v864_v11 }
  0x6a   : > { %748 = vmatprep.mubr.bf16.mxu0 %v865_v12  ;;  %764 = vmatprep.mubr.bf16.mxu1 %v866_v13 }
  0x71   : > { %749 = vmatmul.mubr.bf16.gmra.mxu0 %v867_v14  ;;  %765 = vmatmul.mubr.bf16.gmra.mxu1 %v868_v15 }
  0x72   : > { %752 = vmatprep.mubr.bf16.mxu0 %v869_v16  ;;  %768 = vmatprep.mubr.bf16.mxu1 %v870_v17 }
  0x79   : > { %753 = vmatmul.mubr.bf16.gmra.mxu0 %v871_v18  ;;  %769 = vmatmul.mubr.bf16.gmra.mxu1 %v872_v19 }
  0x7a   : > { %756 = vmatprep.mubr.bf16.mxu0 %v873_v20  ;;  %772 = vmatprep.mubr.bf16.mxu1 %v874_v21 }
  0x81   : > { %757 = vmatmul.mubr.bf16.gmra.mxu0 %v875_v22  ;;  %773 = vmatmul.mubr.bf16.gmra.mxu1 %v876_v23 }
 0x129   : > { %v746_v24 = vpop.f32.mrf.mxu0  ;;  %v762_v25 = vpop.f32.mrf.mxu1 }
 0x12a   : > { %535 = vst [vmem:[%s1176_s17 + $0x10] sm:$0xff] %v746_v24  ;;  %551 = vst [vmem:[%s1176_s17 + $0x90] sm:$0xff] %v762_v25 }
 0x12b   : > { %v406_v26 = vpop.f32.mrf.mxu0  ;;  %v470_v27 = vpop.f32.mrf.mxu1 }
 0x12c   : > { %533 = vst [vmem:[%s1176_s17] sm:$0xff] %v406_v26  ;;  %549 = vst [vmem:[%s1176_s17 + $0x80] sm:$0xff] %v470_v27 }
 0x12d   : > { %v747_v28 = vpop.f32.mrf.mxu0  ;;  %v763_v29 = vpop.f32.mrf.mxu1 }
 0x12e   : > { %536 = vst [vmem:[%s1176_s17 + $0x18] sm:$0xff] %v747_v28  ;;  %552 = vst [vmem:[%s1176_s17 + $0x98] sm:$0xff] %v763_v29 }
 0x12f   : > { %v409_v30 = vpop.f32.mrf.mxu0  ;;  %v473_v31 = vpop.f32.mrf.mxu1 }
 0x130   : > { %534 = vst [vmem:[%s1176_s17 + $0x8] sm:$0xff] %v409_v30  ;;  %550 = vst [vmem:[%s1176_s17 + $0x88] sm:$0xff] %v473_v31 }
 0x131   : > { %v750_v32 = vpop.f32.mrf.mxu0  ;;  %v766_v33 = vpop.f32.mrf.mxu1 }
 0x132   : > { %539 = vst [vmem:[%s1176_s17 + $0x30] sm:$0xff] %v750_v32  ;;  %555 = vst [vmem:[%s1176_s17 + $0xb0] sm:$0xff] %v766_v33 }
 0x133   : > { %v422_v34 = vpop.f32.mrf.mxu0  ;;  %v486_v35 = vpop.f32.mrf.mxu1 }
 0x134   : > { %537 = vst [vmem:[%s1176_s17 + $0x20] sm:$0xff] %v422_v34  ;;  %553 = vst [vmem:[%s1176_s17 + $0xa0] sm:$0xff] %v486_v35 }
 0x135   : > { %v751_v36 = vpop.f32.mrf.mxu0  ;;  %v767_v37 = vpop.f32.mrf.mxu1 }
 0x136   : > { %540 = vst [vmem:[%s1176_s17 + $0x38] sm:$0xff] %v751_v36  ;;  %556 = vst [vmem:[%s1176_s17 + $0xb8] sm:$0xff] %v767_v37 }
 0x137   : > { %v425_v38 = vpop.f32.mrf.mxu0  ;;  %v489_v39 = vpop.f32.mrf.mxu1 }
 0x138   : > { %538 = vst [vmem:[%s1176_s17 + $0x28] sm:$0xff] %v425_v38  ;;  %554 = vst [vmem:[%s1176_s17 + $0xa8] sm:$0xff] %v489_v39 }
 0x139   : > { %v754_v40 = vpop.f32.mrf.mxu0  ;;  %v770_v41 = vpop.f32.mrf.mxu1 }
 0x13a   : > { %543 = vst [vmem:[%s1176_s17 + $0x50] sm:$0xff] %v754_v40  ;;  %559 = vst [vmem:[%s1176_s17 + $0xd0] sm:$0xff] %v770_v41 }
 0x13b   : > { %v438_v42 = vpop.f32.mrf.mxu0  ;;  %v502_v43 = vpop.f32.mrf.mxu1 }
 0x13c   : > { %541 = vst [vmem:[%s1176_s17 + $0x40] sm:$0xff] %v438_v42  ;;  %557 = vst [vmem:[%s1176_s17 + $0xc0] sm:$0xff] %v502_v43 }
 0x13d   : > { %v755_v44 = vpop.f32.mrf.mxu0  ;;  %v771_v45 = vpop.f32.mrf.mxu1 }
 0x13e   : > { %544 = vst [vmem:[%s1176_s17 + $0x58] sm:$0xff] %v755_v44  ;;  %560 = vst [vmem:[%s1176_s17 + $0xd8] sm:$0xff] %v771_v45 }
 0x13f   : > { %v441_v46 = vpop.f32.mrf.mxu0  ;;  %v505_v47 = vpop.f32.mrf.mxu1 }
 0x140   : > { %542 = vst [vmem:[%s1176_s17 + $0x48] sm:$0xff] %v441_v46  ;;  %558 = vst [vmem:[%s1176_s17 + $0xc8] sm:$0xff] %v505_v47 }
 0x141   : > { %v758_v48 = vpop.f32.mrf.mxu0  ;;  %v774_v49 = vpop.f32.mrf.mxu1 }
 0x142   : > { %547 = vst [vmem:[%s1176_s17 + $0x70] sm:$0xff] %v758_v48  ;;  %563 = vst [vmem:[%s1176_s17 + $0xf0] sm:$0xff] %v774_v49 }
 0x143   : > { %v454_v50 = vpop.f32.mrf.mxu0  ;;  %v518_v51 = vpop.f32.mrf.mxu1 }
 0x144   : > { %545 = vst [vmem:[%s1176_s17 + $0x60] sm:$0xff] %v454_v50  ;;  %561 = vst [vmem:[%s1176_s17 + $0xe0] sm:$0xff] %v518_v51 }
 0x145   : > { %v759_v52 = vpop.f32.mrf.mxu0  ;;  %v775_v53 = vpop.f32.mrf.mxu1 }
 0x146   : > { %548 = vst [vmem:[%s1176_s17 + $0x78] sm:$0xff] %v759_v52  ;;  %564 = vst [vmem:[%s1176_s17 + $0xf8] sm:$0xff] %v775_v53 }
 0x147   : > { %v457_v54 = vpop.f32.mrf.mxu0  ;;  %v521_v55 = vpop.f32.mrf.mxu1 }
 0x148   : > { %546 = vst [vmem:[%s1176_s17 + $0x68] sm:$0xff] %v457_v54  ;;  %562 = vst [vmem:[%s1176_s17 + $0xe8] sm:$0xff] %v521_v55 }
 0x149   : > { %944 = shalt.err (!%p941_p0)
}
 0x14a   : > { %s945_s3 = scalar_lea.hbm %s1211_s19, 4096  ;;  %s949_s7 = scalar_lea.hbm %s1262_s2, 8192 }
 0x14b   : > { %p946_p5 = scmp.ne.s32.totalorder %s1211_s19, %s945_s3  ;;  %p950_p4 = scmp.lt.s32.totalorder %s1211_s19, %s1262_s2 }
 0x14c   : > { %p951_p6 = scmp.lt.s32.totalorder %s949_s7, %s945_s3 }
 0x14d   : > { %p947_p2 = pnand %p946_p5, %p1278_p11 }
 0x14e   : > { %p952_p8 = por %p951_p6, %p950_p4 }
 0x14f   : > { %p948_p1 = pneg %p947_p2 }
 0x151   : > { %p953_p3 = pnand %p952_p8, %p948_p1 }
 0x153   : > { %956 = shalt.err (!%p953_p3)
}
 0x154   : > { %s1006_s24 = smov 128   ;;  %s1007_s15 = smov 8  }
 0x155   : > { %798 = dma.vmem_to_hbm [thread:$0]  (%p1278_p11), %s1213_s26, 4096, %s1211_s19, %s566_s13, %s1006_s24, %s1006_s24, %s1007_s15  }
 0x156 PF: > { %s594_s17 = sand.u32 1, %s987_s9   ;;  %p1279_p7 = scmp.ne.s32.totalorder %s1268_s16, 0 }
 0x157   : > { %p1280_p9 = scmp.ge.s32.totalorder %s999_s12, 2  ;;  %s595_s25 = scalar_lea.sflag [#allocation4], %s594_s17 }
 0x159   : > { %p809_p10 = pnand %p1280_p9, %p1279_p7 }
 0x15b   : > { %p810_p12 = pneg %p809_p10 }
 0x15d   : > { %982 = dma.done.wait (%p810_p12), %s595_s25, 4096  }
 0x15e   : > { %984 = vsyncadd (%p810_p12), %s595_s25, 4294963200  ;;  %p16_p13 = scmp.ge.s32.totalorder %s1077_s21, 4   ;;  %s1281_s9 = smov %s991_s10 }
 0x15f   : > { %s1282_s10 = smov %s995_s11  ;;  %s1283_s11 = smov %s1097_s29 }
 0x160   : > { %s1284_s12 = smov %s1077_s21  ;;  %18 = sbr.rel (!%p16_p13) target bundleno = 6 (0x6), region = 77 }
 0x165   :  { %600 = vsyncpa [#allocation3], 1 }
 0x166   :  { %602 = vsyncpa [#allocation3 + $0x1], 1 }
 0x167   :  { %603 = vsyncpa [#allocation6], 1 }
 0x168   :  { %604 = vsyncpa [#allocation4], 1 }
 0x169   :  { %606 = vsyncpa [#allocation4 + $0x1], 1 }

</bundles_post_ra>
